<compile_context>
chip_gen: v6e
topology: v6e:2x2x1
jax: 0.10.0
libtpu: 0.0.40
codegen_flags: <defaults>
</compile_context>

<pallas_src>
import functools

import jax
import jax.numpy as jnp
from jax.experimental import pallas as pl
from jax.experimental.pallas import tpu as pltpu


def _leaky_relu(x, slope=0.2):
    # max(x, slope*x) == LeakyReLU(slope) for 0 < slope < 1; 2 VALU ops vs 3.
    return jnp.maximum(x, x * slope)


def _round_up(x, m):
    return ((x + m - 1) // m) * m


def _cdiv(a, b):
    return -(-a // b)


def decoder_kernel(
    z_ref,
    w_in_ref, b_in_ref,
    w1_ref, b1_ref,
    w2_ref, b2_ref,
    w_out_ref, b_out_ref,
    out_ref,
    *,
    compute_dtype,
    epilogue_dtype,
):
    """Fused 4-layer MLP on one (TM, latent_dim) batch tile.

    MXU matmuls take compute_dtype (bf16 on the fast path) LHS/RHS and
    accumulate in f32; bias add + LeakyReLU run in epilogue_dtype (bf16 on
    v6e/v7x, f32 on v5e). Weights/biases are the same VMEM blocks every step.
    """
    h = z_ref[...]
    for w_ref, b_ref in (
        (w_in_ref, b_in_ref),
        (w1_ref, b1_ref),
        (w2_ref, b2_ref),
        (w_out_ref, b_out_ref),
    ):
        acc = jnp.dot(
            h.astype(compute_dtype),
            w_ref[...],
            preferred_element_type=jnp.float32,
        )
        h = _leaky_relu(acc.astype(epilogue_dtype) + b_ref[...])
    out_ref[...] = h.astype(out_ref.dtype)


def make_decoder(params, *, compute_dtype=jnp.bfloat16, block_m=512,
                 bf16_epilogue=None):
    """Build a jitted decoder forward. Weight cast/pad is hoisted to here."""
    # --- Epilogue dtype: bf16 bias+activation only where the VPU supports it.
    if bf16_epilogue is None:
        bf16_epilogue = False
        if compute_dtype == jnp.bfloat16:
            try:
                kind = jax.devices()[0].device_kind.lower()
                bf16_epilogue = not any(g in kind for g in ("v2", "v3", "v4", "v5"))
            except Exception:
                bf16_epilogue = False
    epilogue_dtype = jnp.bfloat16 if bf16_epilogue else jnp.float32

    latent_dim = params["w_in"].shape[0]
    out_dim = params["w_out"].shape[1]

    # --- Lane-dense output: pad final layer's columns to a multiple of 128.
    out_pad = _round_up(max(out_dim, 128), 128)
    w_out = params["w_out"]
    b_out = params["b_out"]
    if out_pad != out_dim:
        w_out = jnp.pad(w_out, ((0, 0), (0, out_pad - out_dim)))
        b_out = jnp.pad(b_out, ((0, 0), (0, out_pad - out_dim)))

    # --- One-time casts (halves HBM->VMEM weight traffic for bf16).
    weights = tuple(
        w.astype(compute_dtype)
        for w in (params["w_in"], params["w1"], params["w2"], w_out)
    )
    biases = tuple(
        b.astype(epilogue_dtype)
        for b in (params["b_in"], params["b1"], params["b2"], b_out)
    )
    flat_params = []
    for w, b in zip(weights, biases):
        flat_params += [w, b]
    param_bytes = sum(int(a.size) * a.dtype.itemsize for a in flat_params)

    row_align = 16 if compute_dtype == jnp.bfloat16 else 8

    def forward(z):
        B, ld = z.shape
        assert ld == latent_dim, "latent dim mismatch"

        # --- Batch tiling: big tiles to amortize per-step overhead; keep the
        # grid even when >1 so v7x's 2 TensorCores split the 'parallel' axis.
        tm = min(block_m, _round_up(B, row_align))
        grid_m = _cdiv(B, tm)
        if grid_m > 1 and grid_m % 2 == 1:
            tm = _round_up(_cdiv(B, grid_m + 1), row_align)
            grid_m = _cdiv(B, tm)
        b_padded = tm * grid_m
        if b_padded != B:
            z = jnp.pad(z, ((0, b_padded - B), (0, 0)))

        flops = 2 * b_padded * (
            latent_dim * 64 + 64 * 256 + 256 * 512 + 512 * out_pad
        )
        bytes_accessed = (
            b_padded * latent_dim * z.dtype.itemsize
            + param_bytes
            + b_padded * out_pad * 4
        )

        def _const_spec(shape):
            # Constant block index -> weight/bias block stays VMEM-resident.
            return pl.BlockSpec(shape, lambda i: (0, 0))

        in_specs = [pl.BlockSpec((tm, latent_dim), lambda i: (i, 0))]
        in_specs += [_const_spec(a.shape) for a in flat_params]

        out = pl.pallas_call(
            functools.partial(
                decoder_kernel,
                compute_dtype=compute_dtype,
                epilogue_dtype=epilogue_dtype,
            ),
            out_shape=jax.ShapeDtypeStruct((b_padded, out_pad), jnp.float32),
            grid=(grid_m,),
            in_specs=in_specs,
            out_specs=pl.BlockSpec((tm, out_pad), lambda i: (i, 0)),
            compiler_params=pltpu.CompilerParams(
                dimension_semantics=("parallel",),
            ),
            cost_estimate=pl.CostEstimate(
                flops=flops, transcendentals=0, bytes_accessed=bytes_accessed
            ),
        )(z, *flat_params)

        # TODO(synk): for very large B, let the consumer accept the padded
        # (b_padded, out_pad) slab to skip this extra HBM slice pass.
        return out[:B, :out_dim]

    return jax.jit(forward)


def init_decoder_params(key, latent_dim, output_dim):
    """Deterministic synthetic init (uniform, scaled by fan-in like torch default)."""
    dims = [(latent_dim, 64), (64, 256), (256, 512), (512, output_dim)]
    names = ["w_in", "w1", "w2", "w_out"]
    bnames = ["b_in", "b1", "b2", "b_out"]
    params = {}
    for (d_in, d_out), wn, bn in zip(dims, names, bnames):
        key, kw, kb = jax.random.split(key, 3)
        bound = 1.0 / jnp.sqrt(d_in)
        params[wn] = jax.random.uniform(kw, (d_in, d_out), jnp.float32, -bound, bound)
        params[bn] = jax.random.uniform(kb, (1, d_out), jnp.float32, -bound, bound)
    return params


def decoder_reference(z, params):
    """Pure-JAX f32 reference (highest matmul precision) for correctness checks."""
    hi = jax.lax.Precision.HIGHEST
    h = _leaky_relu(jnp.dot(z, params["w_in"], precision=hi) + params["b_in"])
    h = _leaky_relu(jnp.dot(h, params["w1"], precision=hi) + params["b1"])
    h = _leaky_relu(jnp.dot(h, params["w2"], precision=hi) + params["b2"])
    h = _leaky_relu(jnp.dot(h, params["w_out"], precision=hi) + params["b_out"])
    return h


if __name__ == "__main__":
    key = jax.random.PRNGKey(0)
    k_params, k_z1, k_z2 = jax.random.split(key, 3)

    latent_dim = 8
    output_dim = 32
    params = init_decoder_params(k_params, latent_dim, output_dim)

    # 1) Small batch, f32 compute path (single tile, lane-dense padded output).
    batch = 16
    z = jax.random.normal(k_z1, (batch, latent_dim), dtype=jnp.float32)
    dec_f32 = make_decoder(params, compute_dtype=jnp.float32, bf16_epilogue=False)
    out = jax.block_until_ready(dec_f32(z))
    ref = decoder_reference(z, params)
    assert out.shape == (batch, output_dim)
    assert jnp.allclose(out, ref, atol=1e-4, rtol=1e-4), "f32 mismatch vs reference"

    # 2) Larger batch, multi-tile grid with batch padding, bf16 matmul fast
    #    path (f32 accumulation; bf16 epilogue auto-enabled on v6e/v7x).
    batch2 = 640  # tm=512 -> padded to 1024, grid=(2,) -> even split across TCs
    z2 = jax.random.normal(k_z2, (batch2, latent_dim), dtype=jnp.float32)
    dec_bf16 = make_decoder(params, compute_dtype=jnp.bfloat16, block_m=512)
    out2 = jax.block_until_ready(dec_bf16(z2))
    ref2 = decoder_reference(z2, params)
    assert out2.shape == (batch2, output_dim)
    assert jnp.allclose(out2, ref2, atol=1e-1, rtol=1e-1), "bf16 mismatch vs reference"

    print("KERNEL_OK")
</pallas_src>

<mosaic_0001>
module attributes {stable_mosaic.version = 11 : i64} {
  func.func @decoder_kernel(%arg0: i32, %arg1: memref<16x8xf32, #tpu.memory_space<vmem>>, %arg2: memref<8x64xf32, #tpu.memory_space<vmem>>, %arg3: memref<1x64xf32, #tpu.memory_space<vmem>>, %arg4: memref<64x256xf32, #tpu.memory_space<vmem>>, %arg5: memref<1x256xf32, #tpu.memory_space<vmem>>, %arg6: memref<256x512xf32, #tpu.memory_space<vmem>>, %arg7: memref<1x512xf32, #tpu.memory_space<vmem>>, %arg8: memref<512x128xf32, #tpu.memory_space<vmem>>, %arg9: memref<1x128xf32, #tpu.memory_space<vmem>>, %arg10: memref<16x128xf32, #tpu.memory_space<vmem>>) attributes {dimension_semantics = [#tpu.dimension_semantics<parallel>], iteration_bounds = array<i64: 1>, scalar_prefetch = 0 : i64, scratch_operands = 0 : i64, tpu.core_type = #tpu.core_type<tc>, window_params = [{transform_indices = @transform_0, window_bounds = array<i64: 16, 8>}, {pipeline_mode = #tpu.pipeline_mode<synchronous>, transform_indices = @transform_1, window_bounds = array<i64: 8, 64>}, {pipeline_mode = #tpu.pipeline_mode<synchronous>, transform_indices = @transform_2, window_bounds = array<i64: 1, 64>}, {pipeline_mode = #tpu.pipeline_mode<synchronous>, transform_indices = @transform_3, window_bounds = array<i64: 64, 256>}, {pipeline_mode = #tpu.pipeline_mode<synchronous>, transform_indices = @transform_4, window_bounds = array<i64: 1, 256>}, {pipeline_mode = #tpu.pipeline_mode<synchronous>, transform_indices = @transform_5, window_bounds = array<i64: 256, 512>}, {pipeline_mode = #tpu.pipeline_mode<synchronous>, transform_indices = @transform_6, window_bounds = array<i64: 1, 512>}, {pipeline_mode = #tpu.pipeline_mode<synchronous>, transform_indices = @transform_7, window_bounds = array<i64: 512, 128>}, {pipeline_mode = #tpu.pipeline_mode<synchronous>, transform_indices = @transform_8, window_bounds = array<i64: 1, 128>}, {transform_indices = @transform_9, window_bounds = array<i64: 16, 128>}]} {
    %c0 = arith.constant 0 : index
    %c0_0 = arith.constant 0 : index
    %0 = vector.load %arg1[%c0, %c0_0] : memref<16x8xf32, #tpu.memory_space<vmem>>, vector<16x8xf32>
    %c0_1 = arith.constant 0 : index
    %c0_2 = arith.constant 0 : index
    %1 = vector.load %arg2[%c0_1, %c0_2] : memref<8x64xf32, #tpu.memory_space<vmem>>, vector<8x64xf32>
    %cst = arith.constant dense<0.000000e+00> : vector<16x64xf32>
    %2 = tpu.matmul %0, %1, %cst {dimension_numbers = #tpu.dot_dimension_numbers<[1], [0], [0], [1], [0, 0, 1, 1], [], []>} : vector<16x8xf32>, vector<8x64xf32>, vector<16x64xf32> -> vector<16x64xf32>
    %c0_3 = arith.constant 0 : index
    %c0_4 = arith.constant 0 : index
    %3 = vector.load %arg3[%c0_3, %c0_4] : memref<1x64xf32, #tpu.memory_space<vmem>>, vector<1x64xf32>
    %4 = vector.broadcast %3 : vector<1x64xf32> to vector<16x64xf32>
    %5 = arith.addf %2, %4 : vector<16x64xf32>
    %cst_5 = arith.constant 2.000000e-01 : f32
    %6 = vector.broadcast %cst_5 : f32 to vector<16x64xf32>
    %7 = arith.mulf %5, %6 : vector<16x64xf32>
    %8 = arith.maximumf %5, %7 : vector<16x64xf32>
    %c0_6 = arith.constant 0 : index
    %c0_7 = arith.constant 0 : index
    %9 = vector.load %arg4[%c0_6, %c0_7] : memref<64x256xf32, #tpu.memory_space<vmem>>, vector<64x256xf32>
    %cst_8 = arith.constant dense<0.000000e+00> : vector<16x256xf32>
    %10 = tpu.matmul %8, %9, %cst_8 {dimension_numbers = #tpu.dot_dimension_numbers<[1], [0], [0], [1], [0, 0, 1, 1], [], []>} : vector<16x64xf32>, vector<64x256xf32>, vector<16x256xf32> -> vector<16x256xf32>
    %c0_9 = arith.constant 0 : index
    %c0_10 = arith.constant 0 : index
    %11 = vector.load %arg5[%c0_9, %c0_10] : memref<1x256xf32, #tpu.memory_space<vmem>>, vector<1x256xf32>
    %12 = vector.broadcast %11 : vector<1x256xf32> to vector<16x256xf32>
    %13 = arith.addf %10, %12 : vector<16x256xf32>
    %cst_11 = arith.constant 2.000000e-01 : f32
    %14 = vector.broadcast %cst_11 : f32 to vector<16x256xf32>
    %15 = arith.mulf %13, %14 : vector<16x256xf32>
    %16 = arith.maximumf %13, %15 : vector<16x256xf32>
    %c0_12 = arith.constant 0 : index
    %c0_13 = arith.constant 0 : index
    %17 = vector.load %arg6[%c0_12, %c0_13] : memref<256x512xf32, #tpu.memory_space<vmem>>, vector<256x512xf32>
    %cst_14 = arith.constant dense<0.000000e+00> : vector<16x512xf32>
    %18 = tpu.matmul %16, %17, %cst_14 {dimension_numbers = #tpu.dot_dimension_numbers<[1], [0], [0], [1], [0, 0, 1, 1], [], []>} : vector<16x256xf32>, vector<256x512xf32>, vector<16x512xf32> -> vector<16x512xf32>
    %c0_15 = arith.constant 0 : index
    %c0_16 = arith.constant 0 : index
    %19 = vector.load %arg7[%c0_15, %c0_16] : memref<1x512xf32, #tpu.memory_space<vmem>>, vector<1x512xf32>
    %20 = vector.broadcast %19 : vector<1x512xf32> to vector<16x512xf32>
    %21 = arith.addf %18, %20 : vector<16x512xf32>
    %cst_17 = arith.constant 2.000000e-01 : f32
    %22 = vector.broadcast %cst_17 : f32 to vector<16x512xf32>
    %23 = arith.mulf %21, %22 : vector<16x512xf32>
    %24 = arith.maximumf %21, %23 : vector<16x512xf32>
    %c0_18 = arith.constant 0 : index
    %c0_19 = arith.constant 0 : index
    %25 = vector.load %arg8[%c0_18, %c0_19] : memref<512x128xf32, #tpu.memory_space<vmem>>, vector<512x128xf32>
    %cst_20 = arith.constant dense<0.000000e+00> : vector<16x128xf32>
    %26 = tpu.matmul %24, %25, %cst_20 {dimension_numbers = #tpu.dot_dimension_numbers<[1], [0], [0], [1], [0, 0, 1, 1], [], []>} : vector<16x512xf32>, vector<512x128xf32>, vector<16x128xf32> -> vector<16x128xf32>
    %c0_21 = arith.constant 0 : index
    %c0_22 = arith.constant 0 : index
    %27 = vector.load %arg9[%c0_21, %c0_22] : memref<1x128xf32, #tpu.memory_space<vmem>>, vector<1x128xf32>
    %28 = vector.broadcast %27 : vector<1x128xf32> to vector<16x128xf32>
    %29 = arith.addf %26, %28 : vector<16x128xf32>
    %cst_23 = arith.constant 2.000000e-01 : f32
    %30 = vector.broadcast %cst_23 : f32 to vector<16x128xf32>
    %31 = arith.mulf %29, %30 : vector<16x128xf32>
    %32 = arith.maximumf %29, %31 : vector<16x128xf32>
    %c0_24 = arith.constant 0 : index
    %c0_25 = arith.constant 0 : index
    %33 = vector.load %arg10[%c0_24, %c0_25] : memref<16x128xf32, #tpu.memory_space<vmem>>, vector<16x128xf32>
    tpu.vector_store %arg10[%c0_24, %c0_25], %32 {strides = array<i32>} : memref<16x128xf32, #tpu.memory_space<vmem>>, vector<16x128xf32>,
    return
  }
  func.func @transform_0(%arg0: i32) -> (i32, i32) {
    %c0_i32 = arith.constant 0 : i32
    %c0_i32_0 = arith.constant 0 : i32
    return %arg0, %c0_i32 : i32, i32
  }
  func.func @transform_1(%arg0: i32) -> (i32, i32) {
    %c0_i32 = arith.constant 0 : i32
    %c0_i32_0 = arith.constant 0 : i32
    %c0_i32_1 = arith.constant 0 : i32
    return %c0_i32, %c0_i32_0 : i32, i32
  }
  func.func @transform_2(%arg0: i32) -> (i32, i32) {
    %c0_i32 = arith.constant 0 : i32
    %c0_i32_0 = arith.constant 0 : i32
    %c0_i32_1 = arith.constant 0 : i32
    return %c0_i32, %c0_i32_0 : i32, i32
  }
  func.func @transform_3(%arg0: i32) -> (i32, i32) {
    %c0_i32 = arith.constant 0 : i32
    %c0_i32_0 = arith.constant 0 : i32
    %c0_i32_1 = arith.constant 0 : i32
    return %c0_i32, %c0_i32_0 : i32, i32
  }
  func.func @transform_4(%arg0: i32) -> (i32, i32) {
    %c0_i32 = arith.constant 0 : i32
    %c0_i32_0 = arith.constant 0 : i32
    %c0_i32_1 = arith.constant 0 : i32
    return %c0_i32, %c0_i32_0 : i32, i32
  }
  func.func @transform_5(%arg0: i32) -> (i32, i32) {
    %c0_i32 = arith.constant 0 : i32
    %c0_i32_0 = arith.constant 0 : i32
    %c0_i32_1 = arith.constant 0 : i32
    return %c0_i32, %c0_i32_0 : i32, i32
  }
  func.func @transform_6(%arg0: i32) -> (i32, i32) {
    %c0_i32 = arith.constant 0 : i32
    %c0_i32_0 = arith.constant 0 : i32
    %c0_i32_1 = arith.constant 0 : i32
    return %c0_i32, %c0_i32_0 : i32, i32
  }
  func.func @transform_7(%arg0: i32) -> (i32, i32) {
    %c0_i32 = arith.constant 0 : i32
    %c0_i32_0 = arith.constant 0 : i32
    %c0_i32_1 = arith.constant 0 : i32
    return %c0_i32, %c0_i32_0 : i32, i32
  }
  func.func @transform_8(%arg0: i32) -> (i32, i32) {
    %c0_i32 = arith.constant 0 : i32
    %c0_i32_0 = arith.constant 0 : i32
    %c0_i32_1 = arith.constant 0 : i32
    return %c0_i32, %c0_i32_0 : i32, i32
  }
  func.func @transform_9(%arg0: i32) -> (i32, i32) {
    %c0_i32 = arith.constant 0 : i32
    %c0_i32_0 = arith.constant 0 : i32
    return %arg0, %c0_i32 : i32, i32
  }
}

</mosaic_0001>

<bundles_post_ra>
// kernel: forward.1
= control target key start
LH: loop header
LB: loop body
LE: loop exit
PB: predicated region body
PF: predicated region fallthrough
CT: control target
= control target key end

     0   :  { %14 = vsyncpa [#allocation3], 0  ;;  %s1158_s0 = inlined_call_operand.vmem [shape: f32[16,8], index: 0, kind: input, shape index: {}]   ;;  %s1159_s1 = inlined_call_operand.vmem [shape: f32[8,64], index: 1, kind: input, shape index: {}]   ;;  %s1160_s2 = inlined_call_operand.vmem [shape: f32[1,64], index: 2, kind: input, shape index: {}]   ;;  %s1161_s3 = inlined_call_operand.hbm [shape: f32[64,256], index: 3, kind: input, shape index: {}]   ;;  %s1162_s4 = inlined_call_operand.vmem [shape: f32[1,256], index: 4, kind: input, shape index: {}]   ;;  %s1163_s5 = inlined_call_operand.hbm [shape: f32[256,512], index: 5, kind: input, shape index: {}]   ;;  %s1164_s6 = inlined_call_operand.vmem [shape: f32[1,512], index: 6, kind: input, shape index: {}]   ;;  %s1165_s7 = inlined_call_operand.hbm [shape: f32[512,128], index: 7, kind: input, shape index: {}]   ;;  %s1166_s8 = inlined_call_operand.vmem [shape: f32[1,128], index: 8, kind: input, shape index: {}]   ;;  %s1167_s9 = inlined_call_operand.hbm [shape: f32[16,128], index: 9, kind: output, shape index: {}]  }
   0x1   :  { %15 = vsyncpa [#allocation6], 0 }
   0x2   :  { %16 = vsyncpa [#allocation4], 0  ;;  %s1042_s30 = smov [#allocation5]  }
   0x3   :  { %s42_s10 = sshll.u32 %s1042_s30, 4  ;;  %s43_s10 = int_to_ptr.vmem [resolvable:$true] %s42_s10 }
   0x4   :  { %s964_s11 = scalar_lea.vmem %s43_s10, 16384  ;;  %p969_p1 = scmp.lt.s32.totalorder %s43_s10, %s43_s10 }
   0x5   :  { %p965_p0 = scmp.ne.s32.totalorder %s43_s10, %s964_s11  ;;  %p970_p2 = scmp.lt.s32.totalorder %s964_s11, %s964_s11 }
   0x7   :  { %p971_p3 = por %p970_p2, %p969_p1 }
   0x9   :  { %p972_p4 = pnand %p971_p3, %p965_p0 }
   0xb   :  { %975 = shalt.err (!%p972_p4)
}
   0xc   :  { %s1043_s12 = smov 512   ;;  %s1044_s13 = smov 32  }
   0xd   :  { %48 = dma.hbm_to_vmem [thread:$0]  %s1163_s5, 16384, %s43_s10, [#allocation6], %s1043_s12, %s1043_s12, %s1044_s13  }
   0xe   :  { %s1045_s16 = smov [#allocation2]  }
   0xf   :  { %s28_s17 = sshll.u32 %s1045_s16, 4  ;;  %s29_s17 = int_to_ptr.vmem [resolvable:$true] %s28_s17 }
  0x10   :  { %s984_s18 = scalar_lea.vmem %s29_s17, 2048  ;;  %p989_p6 = scmp.lt.s32.totalorder %s29_s17, %s29_s17 }
  0x11   :  { %p985_p5 = scmp.ne.s32.totalorder %s29_s17, %s984_s18  ;;  %p990_p7 = scmp.lt.s32.totalorder %s984_s18, %s984_s18 }
  0x13   :  { %p991_p8 = por %p990_p7, %p989_p6 }
  0x15   :  { %p992_p9 = pnand %p991_p8, %p985_p5 }
  0x17   :  { %995 = shalt.err (!%p992_p9)
}
  0x18   :  { %s1046_s19 = smov 256   ;;  %s1047_s20 = smov 16  }
  0x19   :  { %34 = dma.hbm_to_vmem [thread:$0]  %s1161_s3, 2048, %s29_s17, [#allocation3], %s1046_s19, %s1046_s19, %s1047_s20  }
  0x1a   :  { %s1048_s23 = smov [#allocation7]  }
  0x1b   :  { %s56_s24 = sshll.u32 %s1048_s23, 4  ;;  %s57_s24 = int_to_ptr.vmem [resolvable:$true] %s56_s24 }
  0x1c   :  { %s1004_s5 = scalar_lea.vmem %s57_s24, 8192  ;;  %p1009_p11 = scmp.lt.s32.totalorder %s57_s24, %s57_s24 }
  0x1d   :  { %p1005_p10 = scmp.ne.s32.totalorder %s57_s24, %s1004_s5  ;;  %p1010_p12 = scmp.lt.s32.totalorder %s1004_s5, %s1004_s5 }
  0x1f   :  { %p1011_p13 = por %p1010_p12, %p1009_p11 }
  0x21   :  { %p1012_p0 = pnand %p1011_p13, %p1005_p10 }
  0x23   :  { %1015 = shalt.err (!%p1012_p0)
}
  0x24   :  { %s1049_s25 = smov 128   ;;  %s1050_s26 = smov 8  }
  0x25   :  { %62 = dma.hbm_to_vmem [thread:$0]  %s1165_s7, 8192, %s57_s24, [#allocation6], %s1049_s25, %s1049_s25, %s1050_s26  }
  0x26   :  { %1036 = dma.done.wait [#allocation3], 2048  }
  0x27   :  { %1037 = vsyncadd [#allocation3], 4294965248 }
  0x28   :  { %1038 = dma.done.wait [#allocation6], 24576  }
  0x29   :  { %1039 = vsyncadd [#allocation6], 4294942720  ;;  %vm84_vm0 = vcmask 64512   ;;  %v76_v0 = vld [vmem:[%s1159_s1] sm:$0xff]  ;;  %v75_v2 = vld [vmem:[%s1158_s0 + $0x8] sm:$0xff]  ;;  %v1051_v19 = vmov 0.0  }
  0x2a   :  { %v74_v1 = vld [vmem:[%s1158_s0] sm:$0xff]  ;;  %940 = vmatprep.subr.mxu0 %v76_v0  ;;  %v185_v3 = vld [vmem:[#allocation2 + $0x78] sm:$0xff]  ;;  %v184_v4 = vld [vmem:[#allocation2 + $0x70] sm:$0xff]  ;;  %269 = vmatprep.mubr.f32.mxu1 %v1051_v19  ;;  %vm198_vm1 = vcmask 523264   ;;  %s1052_s15 = smov [#allocation8]  }
  0x2b   :  { %942 = vmatprep.mubr.msk.f32.mxu0 %vm84_vm0, %v74_v1  ;;  %v183_v5 = vld [vmem:[#allocation2 + $0x68] sm:$0xff]  ;;  %941 = vmatpush3.msra.mxu0 %v76_v0  ;;  %v182_v6 = vld [vmem:[#allocation2 + $0x60] sm:$0xff]  ;;  %v181_v7 = vld [vmem:[#allocation2 + $0x58] sm:$0xff]  ;;  %s842_s16 = sshll.u32 %s1052_s15, 4  ;;  %s843_s16 = int_to_ptr.vmem [resolvable:$true] %s842_s16 }
  0x2c   :  { %221 = vmatprep.subr.mxu1 %v185_v3  ;;  %943 = vmatmul.mubr.msk.f32.vlgmr.msra.gmra.mxu0 %vm84_vm0, %v75_v2  ;;  %v180_v8 = vld [vmem:[#allocation2 + $0x50] sm:$0xff]  ;;  %v179_v9 = vld [vmem:[#allocation2 + $0x48] sm:$0xff]  ;;  %v178_v10 = vld [vmem:[#allocation2 + $0x40] sm:$0xff]  ;;  %p1021_p2 = scmp.lt.s32.totalorder %s843_s16, %s843_s16 }
  0x2d   :  { %222 = vmatpush1.msra.mxu1 %v184_v4  ;;  %v177_v11 = vld [vmem:[#allocation2 + $0x38] sm:$0xff]  ;;  %v176_v12 = vld [vmem:[#allocation2 + $0x30] sm:$0xff]  ;;  %v175_v13 = vld [vmem:[#allocation2 + $0x28] sm:$0xff] }
  0x2e   :  { %223 = vmatprep.subr.mxu1 %v183_v5  ;;  %v174_v14 = vld [vmem:[#allocation2 + $0x20] sm:$0xff]  ;;  %v173_v15 = vld [vmem:[#allocation2 + $0x18] sm:$0xff]  ;;  %v172_v16 = vld [vmem:[#allocation2 + $0x10] sm:$0xff] }
  0x2f   :  { %224 = vmatpush1.msra.mxu1 %v182_v6  ;;  %v171_v17 = vld [vmem:[#allocation2 + $0x8] sm:$0xff]  ;;  %v170_v18 = vld [vmem:[#allocation2] sm:$0xff]  ;;  %v353_v21 = vld [vmem:[#allocation5 + $0x1f8] sm:$0xff] }
  0x30   :  { %225 = vmatprep.subr.mxu1 %v181_v7  ;;  %v351_v20 = vld [vmem:[#allocation5 + $0x1e8] sm:$0xff]  ;;  %v350_v22 = vld [vmem:[#allocation5 + $0x1e0] sm:$0xff] }
  0x31   :  { %226 = vmatpush1.msra.mxu1 %v180_v8  ;;  %440 = vmatprep.subr.mxu0 %v351_v20  ;;  %v347_v23 = vld [vmem:[#allocation5 + $0x1c8] sm:$0xff]  ;;  %v346_v24 = vld [vmem:[#allocation5 + $0x1c0] sm:$0xff]  ;;  %v352_v20 = vld [vmem:[#allocation5 + $0x1f0] sm:$0xff] }
  0x32   :  { %227 = vmatprep.subr.mxu1 %v179_v9  ;;  %441 = vmatpush1.msra.mxu0 %v350_v22  ;;  %v343_v25 = vld [vmem:[#allocation5 + $0x1a8] sm:$0xff]  ;;  %v342_v26 = vld [vmem:[#allocation5 + $0x1a0] sm:$0xff]  ;;  %v348_v22 = vld [vmem:[#allocation5 + $0x1d0] sm:$0xff] }
  0x33   :  { %228 = vmatpush1.msra.mxu1 %v178_v10  ;;  %442 = vmatprep.subr.mxu0 %v347_v23  ;;  %v339_v27 = vld [vmem:[#allocation5 + $0x188] sm:$0xff]  ;;  %v338_v28 = vld [vmem:[#allocation5 + $0x180] sm:$0xff]  ;;  %v345_v23 = vld [vmem:[#allocation5 + $0x1b8] sm:$0xff] }
  0x34   :  { %229 = vmatprep.subr.mxu1 %v177_v11  ;;  %443 = vmatpush1.msra.mxu0 %v346_v24  ;;  %v335_v29 = vld [vmem:[#allocation5 + $0x168] sm:$0xff]  ;;  %v334_v30 = vld [vmem:[#allocation5 + $0x160] sm:$0xff] }
  0x35   :  { %230 = vmatpush1.msra.mxu1 %v176_v12  ;;  %444 = vmatprep.subr.mxu0 %v343_v25  ;;  %v331_v31 = vld [vmem:[#allocation5 + $0x148] sm:$0xff]  ;;  %v330_v32 = vld [vmem:[#allocation5 + $0x140] sm:$0xff]  ;;  %v344_v25 = vld [vmem:[#allocation5 + $0x1b0] sm:$0xff] }
  0x36   :  { %231 = vmatprep.subr.mxu1 %v175_v13  ;;  %445 = vmatpush1.msra.mxu0 %v342_v26  ;;  %v327_v33 = vld [vmem:[#allocation5 + $0x128] sm:$0xff]  ;;  %v326_v34 = vld [vmem:[#allocation5 + $0x120] sm:$0xff]  ;;  %v341_v26 = vld [vmem:[#allocation5 + $0x198] sm:$0xff] }
  0x37   :  { %232 = vmatpush1.msra.mxu1 %v174_v14  ;;  %446 = vmatprep.subr.mxu0 %v339_v27  ;;  %v323_v35 = vld [vmem:[#allocation5 + $0x108] sm:$0xff]  ;;  %v322_v36 = vld [vmem:[#allocation5 + $0x100] sm:$0xff]  ;;  %v340_v27 = vld [vmem:[#allocation5 + $0x190] sm:$0xff] }
  0x38   :  { %233 = vmatprep.subr.mxu1 %v173_v15  ;;  %447 = vmatpush1.msra.mxu0 %v338_v28  ;;  %v319_v37 = vld [vmem:[#allocation5 + $0xe8] sm:$0xff]  ;;  %v318_v38 = vld [vmem:[#allocation5 + $0xe0] sm:$0xff]  ;;  %v337_v28 = vld [vmem:[#allocation5 + $0x178] sm:$0xff] }
  0x39   :  { %234 = vmatpush1.msra.mxu1 %v172_v16  ;;  %448 = vmatprep.subr.mxu0 %v335_v29  ;;  %v315_v39 = vld [vmem:[#allocation5 + $0xc8] sm:$0xff]  ;;  %v314_v40 = vld [vmem:[#allocation5 + $0xc0] sm:$0xff]  ;;  %v336_v29 = vld [vmem:[#allocation5 + $0x170] sm:$0xff] }
  0x3a   :  { %235 = vmatprep.subr.mxu1 %v171_v17  ;;  %449 = vmatpush1.msra.mxu0 %v334_v30  ;;  %v311_v41 = vld [vmem:[#allocation5 + $0xa8] sm:$0xff]  ;;  %v310_v42 = vld [vmem:[#allocation5 + $0xa0] sm:$0xff]  ;;  %v333_v30 = vld [vmem:[#allocation5 + $0x158] sm:$0xff] }
  0x3b   :  { %236 = vmatpush1.msra.mxu1 %v170_v18  ;;  %450 = vmatprep.subr.mxu0 %v331_v31  ;;  %v307_v43 = vld [vmem:[#allocation5 + $0x88] sm:$0xff]  ;;  %v306_v44 = vld [vmem:[#allocation5 + $0x80] sm:$0xff]  ;;  %v332_v31 = vld [vmem:[#allocation5 + $0x150] sm:$0xff] }
  0x3c   :  { %517 = vmatprep.subr.mxu1 %v353_v21  ;;  %451 = vmatpush1.msra.mxu0 %v330_v32  ;;  %v303_v45 = vld [vmem:[#allocation5 + $0x68] sm:$0xff]  ;;  %v302_v46 = vld [vmem:[#allocation5 + $0x60] sm:$0xff]  ;;  %v349_v21 = vld [vmem:[#allocation5 + $0x1d8] sm:$0xff] }
  0x3d   :  { %452 = vmatprep.subr.mxu0 %v327_v33  ;;  %v299_v47 = vld [vmem:[#allocation5 + $0x48] sm:$0xff]  ;;  %v298_v48 = vld [vmem:[#allocation5 + $0x40] sm:$0xff]  ;;  %v328_v32 = vld [vmem:[#allocation5 + $0x130] sm:$0xff] }
  0x3e   :  { %453 = vmatpush1.msra.mxu0 %v326_v34  ;;  %v295_v49 = vld [vmem:[#allocation5 + $0x28] sm:$0xff]  ;;  %v294_v50 = vld [vmem:[#allocation5 + $0x20] sm:$0xff]  ;;  %v325_v33 = vld [vmem:[#allocation5 + $0x118] sm:$0xff] }
  0x3f   :  { %454 = vmatprep.subr.mxu0 %v323_v35  ;;  %v291_v51 = vld [vmem:[#allocation5 + $0x8] sm:$0xff]  ;;  %v290_v52 = vld [vmem:[#allocation5] sm:$0xff]  ;;  %v324_v34 = vld [vmem:[#allocation5 + $0x110] sm:$0xff] }
  0x40   :  { %455 = vmatpush1.msra.mxu0 %v322_v36  ;;  %v415_v53 = vld [vmem:[#allocation5 + $0x3e8] sm:$0xff]  ;;  %v414_v54 = vld [vmem:[#allocation5 + $0x3e0] sm:$0xff]  ;;  %v321_v35 = vld [vmem:[#allocation5 + $0xf8] sm:$0xff] }
  0x41   :  { %456 = vmatprep.subr.mxu0 %v319_v37  ;;  %v411_v55 = vld [vmem:[#allocation5 + $0x3c8] sm:$0xff]  ;;  %v410_v56 = vld [vmem:[#allocation5 + $0x3c0] sm:$0xff]  ;;  %v320_v36 = vld [vmem:[#allocation5 + $0xf0] sm:$0xff] }
  0x42   :  { %457 = vmatpush1.msra.mxu0 %v318_v38  ;;  %v407_v57 = vld [vmem:[#allocation5 + $0x3a8] sm:$0xff]  ;;  %v406_v58 = vld [vmem:[#allocation5 + $0x3a0] sm:$0xff]  ;;  %v317_v37 = vld [vmem:[#allocation5 + $0xd8] sm:$0xff] }
  0x43   :  { %458 = vmatprep.subr.mxu0 %v315_v39  ;;  %v403_v59 = vld [vmem:[#allocation5 + $0x388] sm:$0xff]  ;;  %v402_v60 = vld [vmem:[#allocation5 + $0x380] sm:$0xff]  ;;  %v316_v38 = vld [vmem:[#allocation5 + $0xd0] sm:$0xff] }
  0x44   :  { %459 = vmatpush1.msra.mxu0 %v314_v40  ;;  %v399_v61 = vld [vmem:[#allocation5 + $0x368] sm:$0xff]  ;;  %v398_v62 = vld [vmem:[#allocation5 + $0x360] sm:$0xff]  ;;  %v313_v39 = vld [vmem:[#allocation5 + $0xb8] sm:$0xff] }
  0x45   :  { %460 = vmatprep.subr.mxu0 %v311_v41  ;;  %v395_v63 = vld [vmem:[#allocation5 + $0x348] sm:$0xff]  ;;  %v394_v0 = vld [vmem:[#allocation5 + $0x340] sm:$0xff]  ;;  %v312_v40 = vld [vmem:[#allocation5 + $0xb0] sm:$0xff] }
  0x46   :  { %461 = vmatpush1.msra.mxu0 %v310_v42  ;;  %v391_v1 = vld [vmem:[#allocation5 + $0x328] sm:$0xff]  ;;  %v390_v2 = vld [vmem:[#allocation5 + $0x320] sm:$0xff]  ;;  %v309_v41 = vld [vmem:[#allocation5 + $0x98] sm:$0xff] }
  0x47   :  { %462 = vmatprep.subr.mxu0 %v307_v43  ;;  %v387_v3 = vld [vmem:[#allocation5 + $0x308] sm:$0xff]  ;;  %v386_v4 = vld [vmem:[#allocation5 + $0x300] sm:$0xff]  ;;  %v308_v42 = vld [vmem:[#allocation5 + $0x90] sm:$0xff] }
  0x48   :  { %463 = vmatpush1.msra.mxu0 %v306_v44  ;;  %v383_v5 = vld [vmem:[#allocation5 + $0x2e8] sm:$0xff]  ;;  %v382_v6 = vld [vmem:[#allocation5 + $0x2e0] sm:$0xff]  ;;  %v305_v43 = vld [vmem:[#allocation5 + $0x78] sm:$0xff] }
  0x49   :  { %464 = vmatprep.subr.mxu0 %v303_v45  ;;  %v379_v7 = vld [vmem:[#allocation5 + $0x2c8] sm:$0xff]  ;;  %v378_v8 = vld [vmem:[#allocation5 + $0x2c0] sm:$0xff]  ;;  %v304_v44 = vld [vmem:[#allocation5 + $0x70] sm:$0xff] }
  0x4a   :  { %465 = vmatpush1.msra.mxu0 %v302_v46  ;;  %v375_v9 = vld [vmem:[#allocation5 + $0x2a8] sm:$0xff]  ;;  %v374_v10 = vld [vmem:[#allocation5 + $0x2a0] sm:$0xff]  ;;  %v301_v45 = vld [vmem:[#allocation5 + $0x58] sm:$0xff] }
  0x4b   :  { %466 = vmatprep.subr.mxu0 %v299_v47  ;;  %v855_v12 = vld [vmem:[%s1160_s2] ss:$0 sm:$0xff]  ;;  %v300_v46 = vld [vmem:[#allocation5 + $0x50] sm:$0xff]  ;;  %v297_v47 = vld [vmem:[#allocation5 + $0x38] sm:$0xff] }
  0x4c   :  { %467 = vmatpush1.msra.mxu0 %v298_v48  ;;  %v296_v48 = vld [vmem:[#allocation5 + $0x30] sm:$0xff] }
  0x4d   :  { %468 = vmatprep.subr.mxu0 %v295_v49  ;;  %v293_v49 = vld [vmem:[#allocation5 + $0x18] sm:$0xff] }
  0x4e   :  { %469 = vmatpush1.msra.mxu0 %v294_v50  ;;  %v292_v50 = vld [vmem:[#allocation5 + $0x10] sm:$0xff] }
  0x4f   :  { %470 = vmatprep.subr.mxu0 %v291_v51  ;;  %v417_v51 = vld [vmem:[#allocation5 + $0x3f8] sm:$0xff] }
  0x50   :  { %471 = vmatpush1.msra.mxu0 %v290_v52  ;;  %v416_v52 = vld [vmem:[#allocation5 + $0x3f0] sm:$0xff] }
  0x51   :  { %472 = vmatprep.subr.mxu0 %v415_v53  ;;  %v413_v53 = vld [vmem:[#allocation5 + $0x3d8] sm:$0xff] }
  0x52   :  { %473 = vmatpush2.msra.mxu0 %v414_v54  ;;  %v412_v54 = vld [vmem:[#allocation5 + $0x3d0] sm:$0xff] }
  0x53   :  { %474 = vmatprep.subr.mxu0 %v411_v55  ;;  %v409_v55 = vld [vmem:[#allocation5 + $0x3b8] sm:$0xff] }
  0x54   :  { %475 = vmatpush2.msra.mxu0 %v410_v56  ;;  %v408_v56 = vld [vmem:[#allocation5 + $0x3b0] sm:$0xff] }
  0x55   :  { %476 = vmatprep.subr.mxu0 %v407_v57  ;;  %v405_v57 = vld [vmem:[#allocation5 + $0x398] sm:$0xff] }
  0x56   :  { %477 = vmatpush2.msra.mxu0 %v406_v58  ;;  %v404_v58 = vld [vmem:[#allocation5 + $0x390] sm:$0xff] }
  0x57   :  { %478 = vmatprep.subr.mxu0 %v403_v59  ;;  %v401_v59 = vld [vmem:[#allocation5 + $0x378] sm:$0xff] }
  0x58   :  { %479 = vmatpush2.msra.mxu0 %v402_v60  ;;  %v400_v60 = vld [vmem:[#allocation5 + $0x370] sm:$0xff] }
  0x59   :  { %480 = vmatprep.subr.mxu0 %v399_v61  ;;  %v397_v61 = vld [vmem:[#allocation5 + $0x358] sm:$0xff] }
  0x5a   :  { %481 = vmatpush2.msra.mxu0 %v398_v62  ;;  %v396_v62 = vld [vmem:[#allocation5 + $0x350] sm:$0xff] }
  0x5b   :  { %482 = vmatprep.subr.mxu0 %v395_v63  ;;  %v393_v63 = vld [vmem:[#allocation5 + $0x338] sm:$0xff] }
  0x5c   :  { %483 = vmatpush2.msra.mxu0 %v394_v0  ;;  %v392_v0 = vld [vmem:[#allocation5 + $0x330] sm:$0xff] }
  0x5d   :  { %484 = vmatprep.subr.mxu0 %v391_v1  ;;  %v389_v1 = vld [vmem:[#allocation5 + $0x318] sm:$0xff] }
  0x5e   :  { %485 = vmatpush2.msra.mxu0 %v390_v2  ;;  %v388_v2 = vld [vmem:[#allocation5 + $0x310] sm:$0xff] }
  0x5f   :  { %486 = vmatprep.subr.mxu0 %v387_v3  ;;  %v385_v3 = vld [vmem:[#allocation5 + $0x2f8] sm:$0xff] }
  0x60   :  { %487 = vmatpush2.msra.mxu0 %v386_v4  ;;  %v384_v4 = vld [vmem:[#allocation5 + $0x2f0] sm:$0xff] }
  0x61   :  { %488 = vmatprep.subr.mxu0 %v383_v5  ;;  %v381_v5 = vld [vmem:[#allocation5 + $0x2d8] sm:$0xff] }
  0x62   :  { %489 = vmatpush2.msra.mxu0 %v382_v6  ;;  %v380_v6 = vld [vmem:[#allocation5 + $0x2d0] sm:$0xff] }
  0x63   :  { %490 = vmatprep.subr.mxu0 %v379_v7  ;;  %v377_v7 = vld [vmem:[#allocation5 + $0x2b8] sm:$0xff] }
  0x64   :  { %491 = vmatpush2.msra.mxu0 %v378_v8  ;;  %v376_v8 = vld [vmem:[#allocation5 + $0x2b0] sm:$0xff] }
  0x65   :  { %492 = vmatprep.subr.mxu0 %v375_v9  ;;  %v371_v9 = vld [vmem:[#allocation5 + $0x288] sm:$0xff] }
  0x66   :  { %493 = vmatpush2.msra.mxu0 %v374_v10  ;;  %v373_v10 = vld [vmem:[#allocation5 + $0x298] sm:$0xff] }
  0x67   :  { %494 = vmatprep.subr.mxu0 %v371_v9  ;;  %v668_v9 = vld [vmem:[#allocation7 + $0x1d0] sm:$0xff] }
  0xec   :  { %v944_v11 = vpop.f32.mrf.mxu0 }
  0xed   :  { %v163_v14 = vadd.f32 %v944_v11, %v855_v12  ;;  %v370_v11 = vld [vmem:[#allocation5 + $0x280] sm:$0xff] }
  0xee   :  { %v157_v13 = vpop.f32.mrf.mxu0  ;;  %495 = vmatpush2.msra.mxu0 %v370_v11  ;;  %v652_v11 = vld [vmem:[#allocation7 + $0x150] sm:$0xff] }
  0xef   :  { %v158_v15 = vadd.f32 %v855_v12, %v157_v13  ;;  %v167_v17 = vmul.f32 0.2, %v163_v14  ;;  %v372_v12 = vld [vmem:[#allocation5 + $0x290] sm:$0xff]  ;;  %v367_v13 = vld [vmem:[#allocation5 + $0x268] sm:$0xff] }
  0xf0   :  { %496 = vmatprep.subr.mxu0 %v367_v13  ;;  %v667_v13 = vld [vmem:[#allocation7 + $0x1c8] sm:$0xff] }
  0xf1   :  { %v166_v16 = vmul.f32 0.2, %v158_v15  ;;  %v169_v24 = vmax.f32 %v163_v14, %v167_v17  ;;  %v369_v14 = vld [vmem:[#allocation5 + $0x278] sm:$0xff]  ;;  %v363_v17 = vld [vmem:[#allocation5 + $0x248] sm:$0xff] }
  0xf3   :  { %v168_v18 = vmax.f32 %v158_v15, %v166_v16  ;;  %v366_v15 = vld [vmem:[#allocation5 + $0x260] sm:$0xff]  ;;  %v368_v16 = vld [vmem:[#allocation5 + $0x270] sm:$0xff] }
  0xf4   :  { %497 = vmatpush2.msra.mxu0 %v366_v15  ;;  %v651_v15 = vld [vmem:[#allocation7 + $0x148] sm:$0xff] }
  0xf5   :  { %858 = vmatmul.mubr.msk.f32.vlgmr.msra.gmra.mxu1 %vm198_vm1, %v168_v18  ;;  %v365_v18 = vld [vmem:[#allocation5 + $0x258] sm:$0xff]  ;;  %498 = vmatprep.subr.mxu0 %v363_v17  ;;  %v666_v17 = vld [vmem:[#allocation7 + $0x1c0] sm:$0xff] }
  0xf6   :  { %275 = vmatprep.mubr.f32.mxu1 %v1051_v19  ;;  %518 = vmatpush1.msra.mxu1 %v352_v20  ;;  %v329_v19 = vld [vmem:[#allocation5 + $0x138] sm:$0xff]  ;;  %v362_v20 = vld [vmem:[#allocation5 + $0x240] sm:$0xff] }
  0xf7   :  { %519 = vmatprep.subr.mxu1 %v349_v21  ;;  %v364_v21 = vld [vmem:[#allocation5 + $0x250] sm:$0xff]  ;;  %499 = vmatpush2.msra.mxu0 %v362_v20  ;;  %v650_v20 = vld [vmem:[#allocation7 + $0x140] sm:$0xff] }
  0xf8   :  { %520 = vmatpush1.msra.mxu1 %v348_v22  ;;  %v359_v22 = vld [vmem:[#allocation5 + $0x228] sm:$0xff] }
  0xf9   :  { %859 = vmatmul.mubr.msk.f32.gmra.mxu1 %vm198_vm1, %v169_v24  ;;  %521 = vmatprep.subr.mxu1 %v345_v23  ;;  %v361_v23 = vld [vmem:[#allocation5 + $0x238] sm:$0xff]  ;;  %v358_v24 = vld [vmem:[#allocation5 + $0x220] sm:$0xff] }
  0xfa   :  { %522 = vmatpush1.msra.mxu1 %v344_v25  ;;  %500 = vmatprep.subr.mxu0 %v359_v22  ;;  %v360_v25 = vld [vmem:[#allocation5 + $0x230] sm:$0xff]  ;;  %v665_v22 = vld [vmem:[#allocation7 + $0x1b8] sm:$0xff] }
  0xfb   :  { %523 = vmatprep.subr.mxu1 %v341_v26  ;;  %501 = vmatpush2.msra.mxu0 %v358_v24  ;;  %v355_v26 = vld [vmem:[#allocation5 + $0x208] sm:$0xff]  ;;  %v649_v24 = vld [vmem:[#allocation7 + $0x138] sm:$0xff] }
  0xfc   :  { %524 = vmatpush1.msra.mxu1 %v340_v27  ;;  %v357_v27 = vld [vmem:[#allocation5 + $0x218] sm:$0xff]  ;;  %502 = vmatprep.subr.mxu0 %v355_v26  ;;  %v664_v26 = vld [vmem:[#allocation7 + $0x1b0] sm:$0xff] }
  0xfd   :  { %525 = vmatprep.subr.mxu1 %v337_v28  ;;  %v354_v28 = vld [vmem:[#allocation5 + $0x200] sm:$0xff] }
  0xfe   :  { %526 = vmatpush1.msra.mxu1 %v336_v29  ;;  %v356_v29 = vld [vmem:[#allocation5 + $0x210] sm:$0xff]  ;;  %503 = vmatpush2.msra.mxu0 %v354_v28 }
  0xff   :  { %527 = vmatprep.subr.mxu1 %v333_v30  ;;  %v641_v30 = vld [vmem:[#allocation7 + $0xf8] sm:$0xff]  ;;  %v648_v28 = vld [vmem:[#allocation7 + $0x130] sm:$0xff] }
 0x100   :  { %528 = vmatpush1.msra.mxu1 %v332_v31  ;;  %v673_v31 = vld [vmem:[#allocation7 + $0x1f8] sm:$0xff]  ;;  %864 = vmatprep.subr.mxu0 %v641_v30  ;;  %v663_v30 = vld [vmem:[#allocation7 + $0x1a8] sm:$0xff] }
 0x101   :  { %529 = vmatprep.subr.mxu1 %v329_v19  ;;  %v188_v19 = vlaneseq }
 0x102   :  { %530 = vmatpush1.msra.mxu1 %v328_v32 }
 0x103   :  { %531 = vmatprep.subr.mxu1 %v325_v33  ;;  %v1129_v32 = vshrl.u32 %v188_v19, 7  ;;  %v647_v19 = vld [vmem:[#allocation7 + $0x128] sm:$0xff] }
 0x104   :  { %532 = vmatpush1.msra.mxu1 %v324_v34  ;;  %v186_v34 = vld [vmem:[%s1162_s4] sm:$0x3] }
 0x105   :  { %533 = vmatprep.subr.mxu1 %v321_v35  ;;  %v190_v33 = vsub.s32 0, %v1129_v32  ;;  %v194_v35 = vsub.s32 1, %v1129_v32 }
 0x106   :  { %534 = vmatpush1.msra.mxu1 %v320_v36 }
 0x107   :  { %535 = vmatprep.subr.mxu1 %v317_v37  ;;  %v191_v36 = vrot.slane %v186_v34, %v190_v33  ;;  %v195_v37 = vrot.slane %v186_v34, %v194_v35  ;;  %v630_v34 = vld [vmem:[#allocation7 + $0xa0] sm:$0xff] }
 0x108   :  { %536 = vmatpush1.msra.mxu1 %v316_v38 }
 0x109   :  { %537 = vmatprep.subr.mxu1 %v313_v39 }
 0x10a   :  { %538 = vmatpush1.msra.mxu1 %v312_v40 }
 0x10b   :  { %539 = vmatprep.subr.mxu1 %v309_v41 }
 0x10c   :  { %540 = vmatpush1.msra.mxu1 %v308_v42 }
 0x10d   :  { %541 = vmatprep.subr.mxu1 %v305_v43 }
 0x10e   :  { %542 = vmatpush1.msra.mxu1 %v304_v44 }
 0x10f   :  { %543 = vmatprep.subr.mxu1 %v301_v45 }
 0x110   :  { %544 = vmatpush1.msra.mxu1 %v300_v46 }
 0x111   :  { %545 = vmatprep.subr.mxu1 %v297_v47 }
 0x112   :  { %546 = vmatpush1.msra.mxu1 %v296_v48 }
 0x113   :  { %547 = vmatprep.subr.mxu1 %v293_v49 }
 0x114   :  { %548 = vmatpush1.msra.mxu1 %v292_v50 }
 0x115   :  { %549 = vmatprep.subr.mxu1 %v417_v51  ;;  %v625_v51 = vld [vmem:[#allocation7 + $0x78] sm:$0xff] }
 0x116   :  { %550 = vmatpush2.msra.mxu1 %v416_v52  ;;  %v657_v52 = vld [vmem:[#allocation7 + $0x178] sm:$0xff] }
 0x117   :  { %551 = vmatprep.subr.mxu1 %v413_v53 }
 0x118   :  { %552 = vmatpush2.msra.mxu1 %v412_v54  ;;  %v640_v54 = vld [vmem:[#allocation7 + $0xf0] sm:$0xff] }
 0x119   :  { %553 = vmatprep.subr.mxu1 %v409_v55  ;;  %v672_v55 = vld [vmem:[#allocation7 + $0x1f0] sm:$0xff] }
 0x11a   :  { %554 = vmatpush2.msra.mxu1 %v408_v56 }
 0x11b   :  { %555 = vmatprep.subr.mxu1 %v405_v57 }
 0x11c   :  { %556 = vmatpush2.msra.mxu1 %v404_v58  ;;  %v624_v58 = vld [vmem:[#allocation7 + $0x70] sm:$0xff] }
 0x11d   :  { %557 = vmatprep.subr.mxu1 %v401_v59  ;;  %v656_v59 = vld [vmem:[#allocation7 + $0x170] sm:$0xff] }
 0x11e   :  { %558 = vmatpush2.msra.mxu1 %v400_v60  ;;  %v639_v60 = vld [vmem:[#allocation7 + $0xe8] sm:$0xff] }
 0x11f   :  { %559 = vmatprep.subr.mxu1 %v397_v61  ;;  %v671_v61 = vld [vmem:[#allocation7 + $0x1e8] sm:$0xff] }
 0x120   :  { %560 = vmatpush2.msra.mxu1 %v396_v62  ;;  %v623_v62 = vld [vmem:[#allocation7 + $0x68] sm:$0xff] }
 0x121   :  { %561 = vmatprep.subr.mxu1 %v393_v63  ;;  %v655_v63 = vld [vmem:[#allocation7 + $0x168] sm:$0xff] }
 0x122   :  { %562 = vmatpush2.msra.mxu1 %v392_v0  ;;  %v638_v0 = vld [vmem:[#allocation7 + $0xe0] sm:$0xff] }
 0x123   :  { %563 = vmatprep.subr.mxu1 %v389_v1  ;;  %v670_v1 = vld [vmem:[#allocation7 + $0x1e0] sm:$0xff] }
 0x124   :  { %564 = vmatpush2.msra.mxu1 %v388_v2  ;;  %v622_v2 = vld [vmem:[#allocation7 + $0x60] sm:$0xff] }
 0x125   :  { %565 = vmatprep.subr.mxu1 %v385_v3  ;;  %v654_v3 = vld [vmem:[#allocation7 + $0x160] sm:$0xff] }
 0x126   :  { %566 = vmatpush2.msra.mxu1 %v384_v4  ;;  %v637_v4 = vld [vmem:[#allocation7 + $0xd8] sm:$0xff] }
 0x127   :  { %567 = vmatprep.subr.mxu1 %v381_v5  ;;  %v669_v5 = vld [vmem:[#allocation7 + $0x1d8] sm:$0xff] }
 0x128   :  { %568 = vmatpush2.msra.mxu1 %v380_v6  ;;  %v621_v6 = vld [vmem:[#allocation7 + $0x58] sm:$0xff] }
 0x129   :  { %569 = vmatprep.subr.mxu1 %v377_v7  ;;  %v653_v7 = vld [vmem:[#allocation7 + $0x158] sm:$0xff] }
 0x12a   :  { %570 = vmatpush2.msra.mxu1 %v376_v8  ;;  %v636_v8 = vld [vmem:[#allocation7 + $0xd0] sm:$0xff] }
 0x12b   :  { %571 = vmatprep.subr.mxu1 %v373_v10  ;;  %v620_v10 = vld [vmem:[#allocation7 + $0x50] sm:$0xff] }
 0x12c   :  { %572 = vmatpush2.msra.mxu1 %v372_v12  ;;  %v635_v12 = vld [vmem:[#allocation7 + $0xc8] sm:$0xff] }
 0x12d   :  { %573 = vmatprep.subr.mxu1 %v369_v14  ;;  %v619_v14 = vld [vmem:[#allocation7 + $0x48] sm:$0xff] }
 0x12e   :  { %574 = vmatpush2.msra.mxu1 %v368_v16  ;;  %v634_v16 = vld [vmem:[#allocation7 + $0xc0] sm:$0xff] }
 0x12f   :  { %575 = vmatprep.subr.mxu1 %v365_v18  ;;  %v618_v18 = vld [vmem:[#allocation7 + $0x40] sm:$0xff] }
 0x130   :  { %576 = vmatpush2.msra.mxu1 %v364_v21  ;;  %v633_v21 = vld [vmem:[#allocation7 + $0xb8] sm:$0xff] }
 0x131   :  { %577 = vmatprep.subr.mxu1 %v361_v23  ;;  %v617_v23 = vld [vmem:[#allocation7 + $0x38] sm:$0xff] }
 0x132   :  { %578 = vmatpush2.msra.mxu1 %v360_v25  ;;  %v632_v25 = vld [vmem:[#allocation7 + $0xb0] sm:$0xff] }
 0x133   :  { %579 = vmatprep.subr.mxu1 %v357_v27  ;;  %v616_v27 = vld [vmem:[#allocation7 + $0x30] sm:$0xff] }
 0x134   :  { %580 = vmatpush2.msra.mxu1 %v356_v29  ;;  %v631_v29 = vld [vmem:[#allocation7 + $0xa8] sm:$0xff] }
 0x135   :  { %902 = vmatprep.subr.mxu1 %v673_v31  ;;  %v615_v31 = vld [vmem:[#allocation7 + $0x28] sm:$0xff] }
 0x1b5   :  { %v271_v38 = vpop.f32.mrf.mxu1 }
 0x1b6   :  { %v272_v39 = vadd.f32 %v271_v38, %v191_v36  ;;  %v646_v38 = vld [vmem:[#allocation7 + $0x120] sm:$0xff] }
 0x1b7   :  { %v273_v40 = vpop.f32.mrf.mxu1 }
 0x1b8   :  { %v274_v41 = vadd.f32 %v273_v40, %v195_v37  ;;  %v282_v42 = vmul.f32 0.2, %v272_v39  ;;  %v661_v40 = vld [vmem:[#allocation7 + $0x198] sm:$0xff] }
 0x1b9   :  { %v277_v43 = vpop.f32.mrf.mxu1 }
 0x1ba   :  { %v283_v44 = vmul.f32 0.2, %v274_v41  ;;  %v278_v45 = vadd.f32 %v277_v43, %v191_v36  ;;  %v286_v49 = vmax.f32 %v272_v39, %v282_v42  ;;  %v662_v36 = vld [vmem:[#allocation7 + $0x1a0] sm:$0xff]  ;;  %v629_v39 = vld [vmem:[#allocation7 + $0x98] sm:$0xff]  ;;  %v628_v43 = vld [vmem:[#allocation7 + $0x90] sm:$0xff] }
 0x1bb   :  { %v279_v46 = vpop.f32.mrf.mxu1  ;;  %v645_v42 = vld [vmem:[#allocation7 + $0x118] sm:$0xff] }
 0x1bc   :  { %v287_v47 = vmax.f32 %v274_v41, %v283_v44  ;;  %v280_v48 = vadd.f32 %v279_v46, %v195_v37  ;;  %v284_v50 = vmul.f32 0.2, %v278_v45  ;;  %v614_v37 = vld [vmem:[#allocation7 + $0x20] sm:$0xff]  ;;  %v613_v41 = vld [vmem:[#allocation7 + $0x18] sm:$0xff]  ;;  %v660_v44 = vld [vmem:[#allocation7 + $0x190] sm:$0xff] }
 0x1bd   :  { %v644_v46 = vld [vmem:[#allocation7 + $0x110] sm:$0xff] }
 0x1be   :  { %v285_v53 = vmul.f32 0.2, %v280_v48  ;;  %504 = vmatprep.mubr.f32.mxu0 %v287_v47  ;;  %581 = vmatprep.mubr.f32.mxu1 %v287_v47  ;;  %v288_v57 = vmax.f32 %v278_v45, %v284_v50  ;;  %v612_v45 = vld [vmem:[#allocation7 + $0x10] sm:$0xff]  ;;  %v627_v47 = vld [vmem:[#allocation7 + $0x88] sm:$0xff] }
 0x1bf   :  { %505 = vmatmul.mubr.f32.vlgmr.msra.gmra.mxu0 %v286_v49  ;;  %582 = vmatmul.mubr.f32.vlgmr.msra.gmra.mxu1 %v286_v49  ;;  %v611_v49 = vld [vmem:[#allocation7 + $0x8] sm:$0xff] }
 0x1c0   :  { %v289_v56 = vmax.f32 %v280_v48, %v285_v53  ;;  %865 = vmatpush3.msra.mxu0 %v625_v51  ;;  %903 = vmatpush3.msra.mxu1 %v657_v52  ;;  %v659_v48 = vld [vmem:[#allocation7 + $0x188] sm:$0xff]  ;;  %v626_v51 = vld [vmem:[#allocation7 + $0x80] sm:$0xff] }
 0x1c1   :  { %866 = vmatprep.subr.mxu0 %v640_v54  ;;  %904 = vmatprep.subr.mxu1 %v672_v55  ;;  %v643_v50 = vld [vmem:[#allocation7 + $0x108] sm:$0xff]  ;;  %v658_v52 = vld [vmem:[#allocation7 + $0x180] sm:$0xff]  ;;  %v430_v55 = vsub.s32 2, %v1129_v32 }
 0x1c2   :  { %510 = vmatprep.mubr.f32.mxu0 %v289_v56  ;;  %587 = vmatprep.mubr.f32.mxu1 %v289_v56  ;;  %v610_v53 = vld [vmem:[#allocation7] sm:$0xff] }
 0x1c3   :  { %511 = vmatmul.mubr.f32.gmra.mxu0 %v288_v57  ;;  %588 = vmatmul.mubr.f32.gmra.mxu1 %v288_v57  ;;  %v642_v54 = vld [vmem:[#allocation7 + $0x100] sm:$0xff]  ;;  %v434_v57 = vsub.s32 3, %v1129_v32 }
 0x1c4   :  { %867 = vmatpush3.msra.mxu0 %v624_v58  ;;  %905 = vmatpush3.msra.mxu1 %v656_v59  ;;  %v418_v56 = vld [vmem:[%s1164_s6] sm:$0xf] }
 0x1c5   :  { %868 = vmatprep.subr.mxu0 %v639_v60  ;;  %906 = vmatprep.subr.mxu1 %v671_v61  ;;  %v423_v58 = vrot.slane %v418_v56, %v190_v33  ;;  %v431_v59 = vrot.slane %v418_v56, %v430_v55  ;;  %v427_v60 = vrot.slane %v418_v56, %v194_v35 }
 0x1c6   :  { %869 = vmatpush3.msra.mxu0 %v623_v62  ;;  %907 = vmatpush3.msra.mxu1 %v655_v63  ;;  %v435_v61 = vrot.slane %v418_v56, %v434_v57 }
 0x1c7   :  { %870 = vmatprep.subr.mxu0 %v638_v0  ;;  %908 = vmatprep.subr.mxu1 %v670_v1 }
 0x1c8   :  { %871 = vmatpush3.msra.mxu0 %v622_v2  ;;  %909 = vmatpush3.msra.mxu1 %v654_v3 }
 0x1c9   :  { %872 = vmatprep.subr.mxu0 %v637_v4  ;;  %910 = vmatprep.subr.mxu1 %v669_v5 }
 0x1ca   :  { %873 = vmatpush3.msra.mxu0 %v621_v6  ;;  %911 = vmatpush3.msra.mxu1 %v653_v7 }
 0x1cb   :  { %874 = vmatprep.subr.mxu0 %v636_v8  ;;  %912 = vmatprep.subr.mxu1 %v668_v9 }
 0x1cc   :  { %875 = vmatpush3.msra.mxu0 %v620_v10  ;;  %913 = vmatpush3.msra.mxu1 %v652_v11 }
 0x1cd   :  { %876 = vmatprep.subr.mxu0 %v635_v12  ;;  %914 = vmatprep.subr.mxu1 %v667_v13 }
 0x1ce   :  { %877 = vmatpush3.msra.mxu0 %v619_v14  ;;  %915 = vmatpush3.msra.mxu1 %v651_v15 }
 0x1cf   :  { %878 = vmatprep.subr.mxu0 %v634_v16  ;;  %916 = vmatprep.subr.mxu1 %v666_v17 }
 0x1d0   :  { %879 = vmatpush3.msra.mxu0 %v618_v18  ;;  %917 = vmatpush3.msra.mxu1 %v650_v20 }
 0x1d1   :  { %880 = vmatprep.subr.mxu0 %v633_v21  ;;  %918 = vmatprep.subr.mxu1 %v665_v22 }
 0x1d2   :  { %881 = vmatpush3.msra.mxu0 %v617_v23  ;;  %919 = vmatpush3.msra.mxu1 %v649_v24 }
 0x1d3   :  { %882 = vmatprep.subr.mxu0 %v632_v25  ;;  %920 = vmatprep.subr.mxu1 %v664_v26 }
 0x1d4   :  { %883 = vmatpush3.msra.mxu0 %v616_v27  ;;  %921 = vmatpush3.msra.mxu1 %v648_v28 }
 0x1d5   :  { %884 = vmatprep.subr.mxu0 %v631_v29  ;;  %922 = vmatprep.subr.mxu1 %v663_v30  ;;  %v860_v30 = vld [vmem:[%s1166_s8] ss:$0 sm:$0xff]  ;;  %s1016_s8 = scalar_lea.vmem %s843_s16, 256 }
 0x1d6   :  { %885 = vmatpush3.msra.mxu0 %v615_v31  ;;  %923 = vmatpush3.msra.mxu1 %v647_v19  ;;  %p1017_p1 = scmp.ne.s32.totalorder %s843_s16, %s1016_s8  ;;  %p1022_p3 = scmp.lt.s32.totalorder %s1016_s8, %s1016_s8 }
 0x1d7   :  { %886 = vmatprep.subr.mxu0 %v630_v34  ;;  %924 = vmatprep.subr.mxu1 %v662_v36 }
 0x1d8   :  { %887 = vmatpush3.msra.mxu0 %v614_v37  ;;  %925 = vmatpush3.msra.mxu1 %v646_v38  ;;  %p1023_p4 = por %p1022_p3, %p1021_p2 }
 0x1d9   :  { %888 = vmatprep.subr.mxu0 %v629_v39  ;;  %926 = vmatprep.subr.mxu1 %v661_v40 }
 0x1da   :  { %889 = vmatpush3.msra.mxu0 %v613_v41  ;;  %927 = vmatpush3.msra.mxu1 %v645_v42  ;;  %p1024_p5 = pnand %p1023_p4, %p1017_p1 }
 0x1db   :  { %890 = vmatprep.subr.mxu0 %v628_v43  ;;  %928 = vmatprep.subr.mxu1 %v660_v44 }
 0x1dc   :  { %891 = vmatpush3.msra.mxu0 %v612_v45  ;;  %929 = vmatpush3.msra.mxu1 %v644_v46 }
 0x1dd   :  { %892 = vmatprep.subr.mxu0 %v627_v47  ;;  %930 = vmatprep.subr.mxu1 %v659_v48 }
 0x1de   :  { %893 = vmatpush3.msra.mxu0 %v611_v49  ;;  %931 = vmatpush3.msra.mxu1 %v643_v50 }
 0x1df   :  { %894 = vmatprep.subr.mxu0 %v626_v51  ;;  %932 = vmatprep.subr.mxu1 %v658_v52 }
 0x1e0   :  { %895 = vmatpush3.msra.mxu0 %v610_v53  ;;  %933 = vmatpush3.msra.mxu1 %v642_v54 }
 0x27f   :  { %v506_v62 = vpop.f32.mrf.mxu0  ;;  %v583_v63 = vpop.f32.mrf.mxu1 }
 0x280   :  { %v507_v0 = vadd.f32 %v506_v62, %v423_v58  ;;  %v584_v1 = vadd.f32 %v583_v63, %v431_v59 }
 0x281   :  { %v508_v2 = vpop.f32.mrf.mxu0  ;;  %v585_v3 = vpop.f32.mrf.mxu1 }
 0x282   :  { %v509_v4 = vadd.f32 %v508_v2, %v427_v60  ;;  %v586_v5 = vadd.f32 %v585_v3, %v435_v61  ;;  %v594_v6 = vmul.f32 0.2, %v507_v0  ;;  %v596_v7 = vmul.f32 0.2, %v584_v1 }
 0x283   :  { %v512_v8 = vpop.f32.mrf.mxu0  ;;  %v589_v9 = vpop.f32.mrf.mxu1 }
 0x284   :  { %v595_v10 = vmul.f32 0.2, %v509_v4  ;;  %v597_v11 = vmul.f32 0.2, %v586_v5  ;;  %v513_v33 = vadd.f32 %v512_v8, %v423_v58  ;;  %v590_v12 = vadd.f32 %v589_v9, %v431_v59 }
 0x285   :  { %v514_v13 = vpop.f32.mrf.mxu0  ;;  %v591_v32 = vpop.f32.mrf.mxu1  ;;  %v602_v17 = vmax.f32 %v507_v0, %v594_v6  ;;  %v604_v18 = vmax.f32 %v584_v1, %v596_v7 }
 0x286   :  { %v603_v35 = vmax.f32 %v509_v4, %v595_v10  ;;  %v605_v14 = vmax.f32 %v586_v5, %v597_v11  ;;  %v515_v15 = vadd.f32 %v514_v13, %v427_v60  ;;  %v592_v16 = vadd.f32 %v591_v32, %v435_v61 }
 0x287   :  { %v598_v20 = vmul.f32 0.2, %v513_v33  ;;  %v600_v21 = vmul.f32 0.2, %v590_v12 }
 0x288   :  { %v599_v22 = vmul.f32 0.2, %v515_v15  ;;  %v601_v23 = vmul.f32 0.2, %v592_v16  ;;  %745 = vmatprep.mubr.f32.mxu0 %v603_v35  ;;  %820 = vmatprep.mubr.f32.mxu1 %v605_v14 }
 0x289   :  { %746 = vmatmul.mubr.f32.vlgmr.msra.gmra.mxu0 %v602_v17  ;;  %821 = vmatmul.mubr.f32.vlgmr.msra.gmra.mxu1 %v604_v18  ;;  %v606_v26 = vmax.f32 %v513_v33, %v598_v20  ;;  %v608_v27 = vmax.f32 %v590_v12, %v600_v21 }
 0x28a   :  { %v607_v24 = vmax.f32 %v515_v15, %v599_v22  ;;  %v609_v25 = vmax.f32 %v592_v16, %v601_v23 }
 0x28c   :  { %750 = vmatprep.mubr.f32.mxu0 %v607_v24  ;;  %825 = vmatprep.mubr.f32.mxu1 %v609_v25 }
 0x28d   :  { %751 = vmatmul.mubr.f32.gmra.mxu0 %v606_v26  ;;  %826 = vmatmul.mubr.f32.gmra.mxu1 %v608_v27 }
 0x349   :  { %v896_v28 = vpop.f32.mrf.mxu0  ;;  %v934_v29 = vpop.f32.mrf.mxu1 }
 0x34b   :  { %v897_v31 = vpop.f32.mrf.mxu0  ;;  %v935_v19 = vpop.f32.mrf.mxu1 }
 0x34c   :  { %v898_v34 = vadd.f32 %v897_v31, %v896_v28  ;;  %v936_v39 = vadd.f32 %v935_v19, %v934_v29 }
 0x34d   :  { %v899_v36 = vpop.f32.mrf.mxu0  ;;  %v937_v37 = vpop.f32.mrf.mxu1 }
 0x34e   :  { %v748_v38 = vadd.f32 %v898_v34, %v860_v30 }
 0x34f   :  { %v900_v40 = vpop.f32.mrf.mxu0  ;;  %v938_v41 = vpop.f32.mrf.mxu1 }
 0x350   :  { %v823_v42 = vadd.f32 %v936_v39, %v748_v38  ;;  %v901_v43 = vadd.f32 %v900_v40, %v899_v36  ;;  %v939_v46 = vadd.f32 %v938_v41, %v937_v37 }
 0x352   :  { %v831_v44 = vmul.f32 0.2, %v823_v42  ;;  %v753_v45 = vadd.f32 %v901_v43, %v860_v30 }
 0x354   :  { %v833_v47 = vmax.f32 %v823_v42, %v831_v44  ;;  %v828_v48 = vadd.f32 %v939_v46, %v753_v45 }
 0x356   :  { %835 = vst [vmem:[#allocation8] sm:$0xff] %v833_v47  ;;  %v832_v49 = vmul.f32 0.2, %v828_v48 }
 0x358   :  { %v834_v50 = vmax.f32 %v828_v48, %v832_v49 }
 0x35a   :  { %836 = vst [vmem:[#allocation8 + $0x8] sm:$0xff] %v834_v50 }
 0x35b   :  { %1027 = shalt.err (!%p1024_p5)
}
 0x35c   :  { %848 = dma.vmem_to_hbm [thread:$0]  %s843_s16, 256, %s1167_s9, [#allocation4], %s1049_s25, %s1049_s25, %s1050_s26  }
 0x35d   :  { %1040 = dma.done.wait [#allocation4], 256  }
 0x35e   :  { %1041 = vsyncadd [#allocation4], 4294967040 }
 0x35f   :  { %852 = vsyncpa [#allocation3], 1 }
 0x360   :  { %853 = vsyncpa [#allocation6], 1 }
 0x361   :  { %854 = vsyncpa [#allocation4], 1 }

</bundles_post_ra>
